<compile_context>
chip_gen: v6e
topology: v6e:2x2x1
jax: 0.10.0
libtpu: 0.0.40
codegen_flags: <defaults>
</compile_context>

<pallas_src>
import functools

import jax
import jax.numpy as jnp
from jax.experimental import pallas as pl
from jax.experimental.pallas import tpu as pltpu

EPS = 1e-5      # nn.BatchNorm2d default eps
SLOPE = 0.01    # nn.LeakyReLU(0.01)


# ----------------------------------------------------------------------------
# Small wrapper-side helpers
# ----------------------------------------------------------------------------
def _vmem_limit_bytes():
    """Per-generation scoped-VMEM budget (~3/4 of physical, capped)."""
    try:
        cap = int(pltpu.get_tpu_info().vmem_capacity_bytes)
        return max(32 * 1024 * 1024, min((cap * 3) // 4, 100 * 1024 * 1024))
    except Exception:
        return 64 * 1024 * 1024


def _row_tile(rows, row_bytes, budget_bytes=4 << 20):
    """Largest divisor of `rows` that is a multiple of 8, fits the byte budget and leaves
    >= 2 grid steps when possible. Falls back to the full extent (exempt from the 8-rule)."""
    cap = max(8, min(rows, budget_bytes // max(1, row_bytes)))
    if rows >= 16:
        cap = min(cap, rows // 2)
    for t in range(cap - cap % 8, 7, -8):          # multiples of 8 only
        if rows % t == 0:
            return t
    return rows


def _bn_affine(s, ss, gamma, beta, count, reps):
    """Fold batch sums into a per-channel affine, tiled to (2, reps*F) for (rows, W*C) slabs."""
    mean = s / count
    var = jnp.maximum(ss / count - mean * mean, 0.0)     # biased variance (training-mode BN)
    scale = gamma * jax.lax.rsqrt(var + EPS)
    shift = beta - mean * scale
    return jnp.stack([jnp.tile(scale, reps), jnp.tile(shift, reps)], axis=0)


def _blockdiag_up_matrix(w1, wup, W, C2, F):
    """Fold conv1x1 (F,2F) + ConvTranspose2d (F,F,2,2) into two block-diagonal lane matrices.

    M[dy][w*C2 + c, (2w + dx)*F + o] = sum_m w1[m, c] * wup[m, o, dy, dx];  shape (2, W*C2, 2W*F).
    """
    w_comb = jnp.einsum("mc,moij->cijo", w1, wup).reshape(C2, 2, 2 * F)   # (c, dy, dx*F+o)
    eye = jnp.eye(W, dtype=w_comb.dtype)
    return jnp.einsum("ab,cdo->dacbo", eye, w_comb).reshape(2, W * C2, 2 * W * F)


def _banded_conv_matrix(w_oihw, W2, F):
    """3x3 SAME conv as banded lane-space matrices B (3, L, L), L = W2*F.

    B[ky][w'*F + ci, w*F + co] = W[ky, w' - w + 1, ci, co] for |w' - w| <= 1, else 0, so that
    out[h, :] = sum_ky a_rowpad[h + ky, :] @ B[ky] (column zero-padding handled by the band edge).
    """
    w = jnp.transpose(w_oihw, (2, 3, 1, 0))              # (ky, kx, ci, co)
    L = W2 * F
    idx = jnp.arange(L)
    src_w, src_c = idx // F, idx % F
    dst_w, dst_c = idx // F, idx % F
    dx = src_w[:, None] - dst_w[None, :]
    valid = (jnp.abs(dx) <= 1).astype(w.dtype)
    kx = jnp.clip(dx + 1, 0, 2)
    B = w[:, kx, src_c[:, None], dst_c[None, :]]         # (3, L, L)
    return B * valid[None, :, :]


# ----------------------------------------------------------------------------
# Pallas kernels
# ----------------------------------------------------------------------------
def _head_kernel(x_ref, m_ref, skip_ref, yup_ref, stats_ref):
    """conv1x1 + ConvTranspose2d(k=2,s=2) as 2 lane-dense matmuls + skip add + partial BN1 sums."""
    x = x_ref[...].astype(jnp.float32)                           # (tr, W*2F) lane-dense
    sk = skip_ref[...].astype(jnp.float32)                       # (tr, 2, W2*F)
    y0 = jnp.dot(x, m_ref[0], preferred_element_type=jnp.float32) + sk[:, 0, :]
    y1 = jnp.dot(x, m_ref[1], preferred_element_type=jnp.float32) + sk[:, 1, :]
    # two dense lane-wide stores into the (tr, 2, L) view -- no in-kernel sublane stack/interleave
    yup_ref[:, 0:1, :] = y0[:, None, :].astype(yup_ref.dtype)
    yup_ref[:, 1:2, :] = y1[:, None, :].astype(yup_ref.dtype)
    # per-tile partial BN1 sums (reduced in the wrapper -> grid stays 'parallel')
    s = jnp.sum(y0, axis=0, keepdims=True) + jnp.sum(y1, axis=0, keepdims=True)
    ss = jnp.sum(y0 * y0, axis=0, keepdims=True) + jnp.sum(y1 * y1, axis=0, keepdims=True)
    stats_ref[0] = jnp.concatenate([s, ss], axis=0)              # (2, L)


def _banded_conv(ap, b_ref, th):
    """3x3 SAME conv on a lane-dense (th+2, L) activation slab: 3 matmuls, contraction dim L."""
    return (jnp.dot(ap[0:th], b_ref[0], preferred_element_type=jnp.float32)
            + jnp.dot(ap[1:th + 1], b_ref[1], preferred_element_type=jnp.float32)
            + jnp.dot(ap[2:th + 2], b_ref[2], preferred_element_type=jnp.float32))


def _res_a_kernel(y_ref, ytop_ref, ybot_ref, bnp_ref, b_ref, t_ref, stats_ref, *, th, R, hh):
    """BN1 affine + LeakyReLU + conv3x3(a) on a row tile with +/-1 row halo + partial BN2 sums."""
    r = pl.program_id(1)
    scale = bnp_ref[0:1, :]
    shift = bnp_ref[1:2, :]

    def act(v):
        z = v.astype(jnp.float32) * scale + shift
        return jnp.where(z >= 0.0, z, SLOPE * z)

    a_cur = act(y_ref[0])                                        # (th, L)
    # halo rows in ACTIVATION space; zeroed at image boundaries (conv zero padding)
    a_top = jnp.where(r > 0, act(ytop_ref[0][hh - 1:hh, :]), 0.0)
    a_bot = jnp.where(r + 1 < R, act(ybot_ref[0][0:1, :]), 0.0)
    ap = jnp.concatenate([a_top, a_cur, a_bot], axis=0)          # (th+2, L)

    acc = _banded_conv(ap, b_ref, th)                            # (th, L) f32
    t_ref[0] = acc.astype(t_ref.dtype)
    stats_ref[0] = jnp.concatenate(
        [jnp.sum(acc, axis=0, keepdims=True),
         jnp.sum(acc * acc, axis=0, keepdims=True)], axis=0)


def _res_b_kernel(t_ref, ttop_ref, tbot_ref, y_ref, bnp_ref, b_ref, o_ref, *, th, R, hh):
    """BN2 affine + LeakyReLU + conv3x3(b) + residual add of y_up (row tile with halo)."""
    r = pl.program_id(1)
    scale = bnp_ref[0:1, :]
    shift = bnp_ref[1:2, :]

    def act(v):
        z = v.astype(jnp.float32) * scale + shift
        return jnp.where(z >= 0.0, z, SLOPE * z)

    a_cur = act(t_ref[0])
    a_top = jnp.where(r > 0, act(ttop_ref[0][hh - 1:hh, :]), 0.0)
    a_bot = jnp.where(r + 1 < R, act(tbot_ref[0][0:1, :]), 0.0)
    ap = jnp.concatenate([a_top, a_cur, a_bot], axis=0)

    acc = _banded_conv(ap, b_ref, th)
    o_ref[0] = (y_ref[0].astype(jnp.float32) + acc).astype(o_ref.dtype)


# ----------------------------------------------------------------------------
# Up_Trans forward
# ----------------------------------------------------------------------------
def up_trans_forward(img_in_1, img_in_2, params):
    N, C2, H, W = img_in_1.shape
    F = C2 // 2
    H2, W2 = 2 * H, 2 * W
    L = W2 * F
    assert img_in_2.shape == (N, F, H2, W2)
    dt = img_in_1.dtype
    vlim = _vmem_limit_bytes()

    # NCHW -> lane-dense (rows, W*C) slabs (wrapper transposes; see TODO at top).
    x1 = jnp.transpose(img_in_1, (0, 2, 3, 1)).reshape(N * H, W * C2)
    skip = jnp.transpose(img_in_2, (0, 2, 3, 1)).reshape(N * H, 2, L)

    # Lane-space weight matrices (built once, tiny at these sizes).
    m_up = _blockdiag_up_matrix(params["w1"], params["wup"], W, C2, F)   # (2, W*2F, W2*F)
    b_a = _banded_conv_matrix(params["w3a"], W2, F)                      # (3, L, L)
    b_b = _banded_conv_matrix(params["w3b"], W2, F)

    # ---- K1: conv1x1 + up-transpose + skip add (+ partial BN1 stats) ---------
    R1 = N * H
    tr = _row_tile(R1, row_bytes=(W * C2 + 4 * L) * 4)
    T1 = R1 // tr
    y_up, p1 = pl.pallas_call(
        _head_kernel,
        out_shape=(jax.ShapeDtypeStruct((R1, 2, L), dt),
                   jax.ShapeDtypeStruct((T1, 2, L), jnp.float32)),
        grid=(T1,),
        in_specs=[pl.BlockSpec((tr, W * C2), lambda i: (i, 0)),
                  pl.BlockSpec((2, W * C2, 2 * W * F), lambda i: (0, 0, 0)),
                  pl.BlockSpec((tr, 2, L), lambda i: (i, 0, 0))],
        out_specs=(pl.BlockSpec((tr, 2, L), lambda i: (i, 0, 0)),
                   pl.BlockSpec((1, 2, L), lambda i: (i, 0, 0))),
        compiler_params=pltpu.CompilerParams(
            dimension_semantics=("parallel",), vmem_limit_bytes=vlim),
    )(x1, m_up, skip)

    count = jnp.float32(N * H2 * W2)
    s1 = p1.sum(axis=0).reshape(2, W2, F).sum(axis=1)            # tiles + W2 -> per-channel
    bnp1 = _bn_affine(s1[0], s1[1], params["g1"], params["b1"], count, W2)

    # ---- K2 / K3 common tiling: row tiles with a +/-1 row halo ---------------
    y3 = y_up.reshape(N, H2, L)                                  # free re-view (same HBM layout)
    th = _row_tile(H2, row_bytes=4 * L * 4)
    R = H2 // th
    if R == 1:
        hh = th
        top_map = lambda n, r: (n, 0, 0)
        bot_map = lambda n, r: (n, 0, 0)
    else:
        hh = 8
        tb = th // 8
        top_map = lambda n, r: (n, jnp.maximum(r * tb - 1, 0), 0)
        bot_map = lambda n, r: (n, jnp.minimum((r + 1) * tb, H2 // 8 - 1), 0)

    cur_spec = pl.BlockSpec((1, th, L), lambda n, r: (n, r, 0))
    top_spec = pl.BlockSpec((1, hh, L), top_map)
    bot_spec = pl.BlockSpec((1, hh, L), bot_map)
    bnp_spec = pl.BlockSpec((2, L), lambda n, r: (0, 0))
    w3_spec = pl.BlockSpec((3, L, L), lambda n, r: (0, 0, 0))

    # ---- K2: BN1 + LeakyReLU + conv3x3(a) (+ partial BN2 stats) --------------
    t1, p2 = pl.pallas_call(
        functools.partial(_res_a_kernel, th=th, R=R, hh=hh),
        out_shape=(jax.ShapeDtypeStruct((N, H2, L), dt),
                   jax.ShapeDtypeStruct((N * R, 2, L), jnp.float32)),
        grid=(N, R),
        in_specs=[cur_spec, top_spec, bot_spec, bnp_spec, w3_spec],
        out_specs=(cur_spec,
                   pl.BlockSpec((1, 2, L), lambda n, r: (n * R + r, 0, 0))),
        compiler_params=pltpu.CompilerParams(
            dimension_semantics=("parallel", "parallel"), vmem_limit_bytes=vlim),
    )(y3, y3, y3, bnp1, b_a)

    s2 = p2.sum(axis=0).reshape(2, W2, F).sum(axis=1)
    bnp2 = _bn_affine(s2[0], s2[1], params["g2"], params["b2"], count, W2)

    # ---- K3: BN2 + LeakyReLU + conv3x3(b) + residual add ---------------------
    out = pl.pallas_call(
        functools.partial(_res_b_kernel, th=th, R=R, hh=hh),
        out_shape=jax.ShapeDtypeStruct((N, H2, L), dt),
        grid=(N, R),
        in_specs=[cur_spec, top_spec, bot_spec, cur_spec, bnp_spec, w3_spec],
        out_specs=cur_spec,
        compiler_params=pltpu.CompilerParams(
            dimension_semantics=("parallel", "parallel"), vmem_limit_bytes=vlim),
    )(t1, t1, t1, y3, bnp2, b_b)

    return jnp.transpose(out.reshape(N, H2, W2, F), (0, 3, 1, 2))    # NCHW out


# ----------------------------------------------------------------------------
# Pure-JAX reference for verification
# ----------------------------------------------------------------------------
def _ref_forward(img1, img2, p):
    N, C2, H, W = img1.shape
    F = C2 // 2
    x1 = jnp.transpose(img1, (0, 2, 3, 1))
    x2 = jnp.transpose(img2, (0, 2, 3, 1))
    y = jnp.einsum("nhwc,mc->nhwm", x1, p["w1"])                       # conv1x1, no bias
    t = jnp.einsum("nhwm,moij->nhiwjo", y, p["wup"])                   # ConvTranspose2d k=2 s=2
    y_up = t.reshape(N, 2 * H, 2 * W, F) + x2

    def bn_lrelu(x, g, b):
        m = jnp.mean(x, axis=(0, 1, 2), keepdims=True)
        v = jnp.mean(jnp.square(x - m), axis=(0, 1, 2), keepdims=True)
        z = (x - m) * jax.lax.rsqrt(v + EPS) * g.reshape(1, 1, 1, -1) + b.reshape(1, 1, 1, -1)
        return jnp.where(z >= 0, z, SLOPE * z)

    def conv3(x, w_oihw):
        w = jnp.transpose(w_oihw, (2, 3, 1, 0))                        # HWIO
        return jax.lax.conv_general_dilated(
            x, w, (1, 1), "SAME", dimension_numbers=("NHWC", "HWIO", "NHWC"))

    r = bn_lrelu(y_up, p["g1"], p["b1"])
    r = conv3(r, p["w3a"])
    r = bn_lrelu(r, p["g2"], p["b2"])
    r = conv3(r, p["w3b"])
    return jnp.transpose(y_up + r, (0, 3, 1, 2))


# ----------------------------------------------------------------------------
if __name__ == "__main__":
    key = jax.random.PRNGKey(0)
    k = jax.random.split(key, 10)

    N, F, H, W = 2, 4, 16, 16        # filters=4; img_in_1 has 2*filters channels
    img_in_1 = jax.random.normal(k[0], (N, 2 * F, H, W), jnp.float32)
    img_in_2 = jax.random.normal(k[1], (N, F, 2 * H, 2 * W), jnp.float32)

    params = {
        "w1": 0.1 * jax.random.normal(k[2], (F, 2 * F), jnp.float32),     # Conv2d(2F->F, k=1) (O, I)
        "wup": 0.1 * jax.random.normal(k[3], (F, F, 2, 2), jnp.float32),  # ConvTranspose2d (I, O, kH, kW)
        "w3a": 0.1 * jax.random.normal(k[4], (F, F, 3, 3), jnp.float32),  # Conv2d 3x3 (OIHW)
        "w3b": 0.1 * jax.random.normal(k[5], (F, F, 3, 3), jnp.float32),
        "g1": 1.0 + 0.1 * jax.random.normal(k[6], (F,), jnp.float32),     # BatchNorm affine params
        "b1": 0.1 * jax.random.normal(k[7], (F,), jnp.float32),
        "g2": 1.0 + 0.1 * jax.random.normal(k[8], (F,), jnp.float32),
        "b2": 0.1 * jax.random.normal(k[9], (F,), jnp.float32),
    }

    out = jax.block_until_ready(up_trans_forward(img_in_1, img_in_2, params))
    ref = jax.block_until_ready(_ref_forward(img_in_1, img_in_2, params))

    assert out.shape == (N, F, 2 * H, 2 * W), out.shape
    max_err = float(jnp.max(jnp.abs(out - ref)))
    assert jnp.allclose(out, ref, rtol=2e-4, atol=2e-4), max_err

    print("KERNEL_OK")
</pallas_src>

<mosaic_0001>
module attributes {stable_mosaic.version = 11 : i64} {
  func.func @_head_kernel(%arg0: i32, %arg1: memref<16x128xf32, #tpu.memory_space<vmem>>, %arg2: memref<2x128x128xf32, #tpu.memory_space<vmem>>, %arg3: memref<16x2x128xf32, #tpu.memory_space<vmem>>, %arg4: memref<16x2x128xf32, #tpu.memory_space<vmem>>, %arg5: memref<1x2x128xf32, #tpu.memory_space<vmem>>) attributes {dimension_semantics = [#tpu.dimension_semantics<parallel>], iteration_bounds = array<i64: 2>, scalar_prefetch = 0 : i64, scratch_operands = 0 : i64, tpu.core_type = #tpu.core_type<tc>, window_params = [{transform_indices = @transform_0, window_bounds = array<i64: 16, 128>}, {pipeline_mode = #tpu.pipeline_mode<synchronous>, transform_indices = @transform_1, window_bounds = array<i64: 2, 128, 128>}, {transform_indices = @transform_2, window_bounds = array<i64: 16, 2, 128>}, {transform_indices = @transform_3, window_bounds = array<i64: 16, 2, 128>}, {transform_indices = @transform_4, window_bounds = array<i64: 1, 2, 128>}]} {
    %c0 = arith.constant 0 : index
    %c0_0 = arith.constant 0 : index
    %0 = vector.load %arg1[%c0, %c0_0] : memref<16x128xf32, #tpu.memory_space<vmem>>, vector<16x128xf32>
    %c0_1 = arith.constant 0 : index
    %c0_2 = arith.constant 0 : index
    %c0_3 = arith.constant 0 : index
    %1 = vector.load %arg3[%c0_1, %c0_2, %c0_3] : memref<16x2x128xf32, #tpu.memory_space<vmem>>, vector<16x2x128xf32>
    %c0_4 = arith.constant 0 : index
    %c0_5 = arith.constant 0 : index
    %c0_6 = arith.constant 0 : index
    %2 = vector.load %arg2[%c0_4, %c0_5, %c0_6] : memref<2x128x128xf32, #tpu.memory_space<vmem>>, vector<1x128x128xf32>
    %3 = vector.shape_cast %2 : vector<1x128x128xf32> to vector<128x128xf32>
    %cst = arith.constant dense<0.000000e+00> : vector<16x128xf32>
    %4 = tpu.matmul %0, %3, %cst {dimension_numbers = #tpu.dot_dimension_numbers<[1], [0], [0], [1], [0, 0, 1, 1], [], []>} : vector<16x128xf32>, vector<128x128xf32>, vector<16x128xf32> -> vector<16x128xf32>
    %5 = vector.extract_strided_slice %1 {offsets = [0, 0, 0], sizes = [16, 1, 128], strides = [1, 1, 1]} : vector<16x2x128xf32> to vector<16x1x128xf32>
    %6 = vector.shape_cast %5 : vector<16x1x128xf32> to vector<16x128xf32>
    %7 = arith.addf %4, %6 : vector<16x128xf32>
    %c1 = arith.constant 1 : index
    %c0_7 = arith.constant 0 : index
    %c0_8 = arith.constant 0 : index
    %8 = vector.load %arg2[%c1, %c0_7, %c0_8] : memref<2x128x128xf32, #tpu.memory_space<vmem>>, vector<1x128x128xf32>
    %9 = vector.shape_cast %8 : vector<1x128x128xf32> to vector<128x128xf32>
    %cst_9 = arith.constant dense<0.000000e+00> : vector<16x128xf32>
    %10 = tpu.matmul %0, %9, %cst_9 {dimension_numbers = #tpu.dot_dimension_numbers<[1], [0], [0], [1], [0, 0, 1, 1], [], []>} : vector<16x128xf32>, vector<128x128xf32>, vector<16x128xf32> -> vector<16x128xf32>
    %11 = vector.extract_strided_slice %1 {offsets = [0, 1, 0], sizes = [16, 1, 128], strides = [1, 1, 1]} : vector<16x2x128xf32> to vector<16x1x128xf32>
    %12 = vector.shape_cast %11 : vector<16x1x128xf32> to vector<16x128xf32>
    %13 = arith.addf %10, %12 : vector<16x128xf32>
    %14 = vector.shape_cast %7 : vector<16x128xf32> to vector<16x1x128xf32>
    %c0_10 = arith.constant 0 : index
    %c0_11 = arith.constant 0 : index
    %c0_12 = arith.constant 0 : index
    %15 = vector.load %arg4[%c0_10, %c0_11, %c0_12] : memref<16x2x128xf32, #tpu.memory_space<vmem>>, vector<16x1x128xf32>
    tpu.vector_store %arg4[%c0_10, %c0_11, %c0_12], %14 {strides = array<i32>} : memref<16x2x128xf32, #tpu.memory_space<vmem>>, vector<16x1x128xf32>,
    %16 = vector.shape_cast %13 : vector<16x128xf32> to vector<16x1x128xf32>
    %c0_13 = arith.constant 0 : index
    %c1_14 = arith.constant 1 : index
    %c0_15 = arith.constant 0 : index
    %17 = vector.load %arg4[%c0_13, %c1_14, %c0_15] : memref<16x2x128xf32, #tpu.memory_space<vmem>>, vector<16x1x128xf32>
    tpu.vector_store %arg4[%c0_13, %c1_14, %c0_15], %16 {strides = array<i32>} : memref<16x2x128xf32, #tpu.memory_space<vmem>>, vector<16x1x128xf32>,
    %cst_16 = arith.constant dense<0.000000e+00> : vector<128xf32>
    %18 = vector.multi_reduction <add>, %7, %cst_16 [0] : vector<16x128xf32> to vector<128xf32>
    %19 = vector.shape_cast %18 : vector<128xf32> to vector<1x128xf32>
    %cst_17 = arith.constant dense<0.000000e+00> : vector<128xf32>
    %20 = vector.multi_reduction <add>, %13, %cst_17 [0] : vector<16x128xf32> to vector<128xf32>
    %21 = vector.shape_cast %20 : vector<128xf32> to vector<1x128xf32>
    %22 = arith.addf %19, %21 : vector<1x128xf32>
    %23 = arith.mulf %7, %7 : vector<16x128xf32>
    %cst_18 = arith.constant dense<0.000000e+00> : vector<128xf32>
    %24 = vector.multi_reduction <add>, %23, %cst_18 [0] : vector<16x128xf32> to vector<128xf32>
    %25 = vector.shape_cast %24 : vector<128xf32> to vector<1x128xf32>
    %26 = arith.mulf %13, %13 : vector<16x128xf32>
    %cst_19 = arith.constant dense<0.000000e+00> : vector<128xf32>
    %27 = vector.multi_reduction <add>, %26, %cst_19 [0] : vector<16x128xf32> to vector<128xf32>
    %28 = vector.shape_cast %27 : vector<128xf32> to vector<1x128xf32>
    %29 = arith.addf %25, %28 : vector<1x128xf32>
    %30 = tpu.concatenate %22, %29 in 0 : vector<1x128xf32>, vector<1x128xf32> -> vector<2x128xf32>
    %c0_20 = arith.constant 0 : index
    %c0_21 = arith.constant 0 : index
    %c0_22 = arith.constant 0 : index
    %31 = vector.load %arg5[%c0_20, %c0_21, %c0_22] : memref<1x2x128xf32, #tpu.memory_space<vmem>>, vector<1x2x128xf32>
    %32 = vector.shape_cast %31 : vector<1x2x128xf32> to vector<2x128xf32>
    %33 = vector.shape_cast %30 : vector<2x128xf32> to vector<1x2x128xf32>
    tpu.vector_store %arg5[%c0_20, %c0_21, %c0_22], %33 {strides = array<i32>} : memref<1x2x128xf32, #tpu.memory_space<vmem>>, vector<1x2x128xf32>,
    return
  }
  func.func @transform_0(%arg0: i32) -> (i32, i32) {
    %c0_i32 = arith.constant 0 : i32
    %c0_i32_0 = arith.constant 0 : i32
    return %arg0, %c0_i32 : i32, i32
  }
  func.func @transform_1(%arg0: i32) -> (i32, i32, i32) {
    %c0_i32 = arith.constant 0 : i32
    %c0_i32_0 = arith.constant 0 : i32
    %c0_i32_1 = arith.constant 0 : i32
    %c0_i32_2 = arith.constant 0 : i32
    return %c0_i32, %c0_i32_0, %c0_i32_1 : i32, i32, i32
  }
  func.func @transform_2(%arg0: i32) -> (i32, i32, i32) {
    %c0_i32 = arith.constant 0 : i32
    %c0_i32_0 = arith.constant 0 : i32
    %c0_i32_1 = arith.constant 0 : i32
    return %arg0, %c0_i32, %c0_i32_0 : i32, i32, i32
  }
  func.func @transform_3(%arg0: i32) -> (i32, i32, i32) {
    %c0_i32 = arith.constant 0 : i32
    %c0_i32_0 = arith.constant 0 : i32
    %c0_i32_1 = arith.constant 0 : i32
    return %arg0, %c0_i32, %c0_i32_0 : i32, i32, i32
  }
  func.func @transform_4(%arg0: i32) -> (i32, i32, i32) {
    %c0_i32 = arith.constant 0 : i32
    %c0_i32_0 = arith.constant 0 : i32
    %c0_i32_1 = arith.constant 0 : i32
    return %arg0, %c0_i32, %c0_i32_0 : i32, i32, i32
  }
}

</mosaic_0001>

<bundles_post_ra>
// kernel: tpu_custom_call.1
= control target key start
LH: loop header
LB: loop body
LE: loop exit
PB: predicated region body
PF: predicated region fallthrough
CT: control target
= control target key end

     0   :  { %10 = vsyncpa [#allocation3], 0  ;;  %s1882_s0 = inlined_call_operand.hbm [shape: f32[32,128], index: 0, kind: input, shape index: {}]   ;;  %s1883_s1 = inlined_call_operand.hbm [shape: f32[2,128,128], index: 1, kind: input, shape index: {}]   ;;  %s1884_s2 = inlined_call_operand.hbm [shape: f32[32,2,128], index: 2, kind: input, shape index: {}]   ;;  %s1885_s3 = inlined_call_operand.hbm [shape: f32[32,2,128], index: 3, kind: output, shape index: {0}]   ;;  %s1886_s4 = inlined_call_operand.hbm [shape: f32[2,2,128], index: 4, kind: output, shape index: {1}]  }
   0x1   :  { %12 = vsyncpa [#allocation3 + $0x1], 0 }
   0x2   :  { %13 = vsyncpa [#allocation6], 0 }
   0x3   :  { %14 = vsyncpa [#allocation4], 0 }
   0x4   :  { %16 = vsyncpa [#allocation4 + $0x1], 0 }
   0x5   :  { %17 = vsyncpa [#allocation10], 0 }
   0x6   :  { %19 = vsyncpa [#allocation10 + $0x1], 0  ;;  %s1479_s15 = smov 0   ;;  %s1481_s16 = smov 0  }
   0x7   :  { %s1483_s17 = smov 0   ;;  %s1485_s18 = smov 0  }
   0x8 LB: > { %s1500_s19 = sadd.s32 1, %s1440_s18   ;;  %s32_s20 = sadd.s32 1, %s1436_s17  ;;  %s1440_s18 = sphi %s1485_s18, %s1909_s18   ;;  %s1436_s17 = sphi %s1483_s17, %s1908_s17   ;;  %s1432_s16 = sphi %s1481_s16, %s1907_s16   ;;  %s1428_s15 = sphi %s1479_s15, %s1906_s15  }
   0x9   : > { %s29_s21 = ssub.s32 %s1440_s18, %s1500_s19  ;;  %p39_p0 = scmp.ne.s32.totalorder %s1436_s17, %s1432_s16 }
   0xa   : > { %p30_p1 = scmp.eq.s32.totalorder %s29_s21, 0  ;;  %p40_p2 = scmp.eq.s32.totalorder %s1440_s18, 0 }
   0xb   : > { %p1213_p5 = scmp.lt.s32.totalorder %s1440_s18, 2  ;;  %s181_s23 = sand.u32 1, %s1440_s18  }
   0xc   : > { %s1509_s22 = scalar_select %p30_p1, %s1436_s17, %s32_s20  }
   0xd   : > { %p41_p3 = por %p40_p2, %p39_p0  ;;  %s183_s24 = sand.u32 1, %s1436_s17  }
   0xe   : > { %s1038_s25 = sshll.u32 %s183_s24, 4  ;;  %s1073_s26 = sshll.u32 %s1440_s18, 8 }
   0xf   : > { %s1522_s29 = scalar_lea.hbm %s1882_s0, %s1073_s26  ;;  %s185_s30 = scalar_lea.vmem [#allocation2], %s1038_s25 }
  0x10   : > { %s192_s5 = sshll.u32 %s185_s30, 4  ;;  %p1524_p6 = pnand %p1213_p5, %p41_p3  ;;  %s1528_s5 = int_to_ptr.vmem [resolvable:$true] %s192_s5 }
  0x11   : > { %s1530_s7 = sshll.u32 %s183_s24, 5  ;;  %s1532_s8 = scalar_lea.sflag [#allocation3], %s181_s23 }
  0x12   : > { %s1256_s9 = scalar_lea.hbm %s1522_s29, 256  ;;  %p1258_p8 = pneg %p1524_p6 }
  0x13   : > { %p1257_p7 = scmp.ne.s32.totalorder %s1522_s29, %s1256_s9  ;;  %s1261_s12 = scalar_lea.hbm %s1882_s0, 512 }
  0x14   : > { %p1262_p11 = scmp.lt.s32.totalorder %s1522_s29, %s1882_s0  ;;  %p1263_p12 = scmp.lt.s32.totalorder %s1261_s12, %s1256_s9 }
  0x15   : > { %p1259_p9 = pnand %p1258_p8, %p1257_p7 }
  0x16   : > { %p1264_p13 = por %p1263_p12, %p1262_p11 }
  0x17   : > { %p1260_p10 = pneg %p1259_p9 }
  0x19   : > { %p1265_p1 = pnand %p1264_p13, %p1260_p10 }
  0x1b   : > { %1268 = shalt.err (!%p1265_p1)
}
  0x1c   : > { %s1269_s20 = scalar_lea.vmem %s1528_s5, 256  ;;  %s1442_s21 = smov [#allocation2]  }
  0x1d   : > { %p1270_p2 = scmp.ne.s32.totalorder %s1528_s5, %s1269_s20  ;;  %s1274_s23 = sshll.u32 %s1442_s21, 4  ;;  %s1275_s23 = int_to_ptr.vmem [resolvable:$false] %s1274_s23 }
  0x1e   : > { %s1276_s24 = scalar_lea.vmem %s1275_s23, 512  ;;  %p1277_p7 = scmp.lt.s32.totalorder %s1528_s5, %s1275_s23 }
  0x1f   : > { %p1272_p3 = pnand %p1270_p2, %p1258_p8  ;;  %p1278_p9 = scmp.lt.s32.totalorder %s1276_s24, %s1269_s20 }
  0x21   : > { %p1273_p5 = pneg %p1272_p3  ;;  %p1279_p4 = por %p1278_p9, %p1277_p7 }
  0x23   : > { %p1280_p11 = pnand %p1279_p4, %p1273_p5 }
  0x25   : > { %1283 = shalt.err (!%p1280_p11)
}
  0x26   : > { %s1888_s25 = smov 128   ;;  %s1444_s26 = smov 8  }
  0x27   : > { %1201 = dma.hbm_to_vmem [thread:$0]  (!%p1524_p6), %s1522_s29, 256, %s1528_s5, %s1532_s8, %s1888_s25, %s1888_s25, %s1444_s26  }
  0x28   : > { %s206_s27 = scalar_lea.vmem [#allocation7], %s1530_s7  ;;  %s1564_s30 = sadd.s32 4294967295, %s1440_s18  }
  0x29   : > { %s213_s28 = sshll.u32 %s206_s27, 4  ;;  %s1034_s9 = sadd.s32 4294967294, %s1440_s18   ;;  %s1604_s28 = int_to_ptr.vmem [resolvable:$true] %s213_s28 }
  0x2a   : > { %p45_p4 = scmp.ne.s32.totalorder %s1432_s16, %s1428_s15  ;;  %p1887_p10 = scmp.eq.s32.totalorder %s1564_s30, 0 }
  0x2b   : > { %p116_p12 = scmp.eq.s32.totalorder %s1564_s30, 1  ;;  %p122_p13 = scmp.eq.s32.totalorder %s1034_s9, 1 }
  0x2c   : > { %p1035_p1 = scmp.ge.s32.totalorder %s1440_s18, 1  ;;  %p1574_p2 = por %p1887_p10, %p45_p4 }
  0x2d   : > { %p1581_p3 = por %p116_p12, %p39_p0  ;;  %p1585_p5 = por %p122_p13, %p45_p4 }
  0x2e   : > { %s1893_s10 = scalar_select %p1574_p2, 1, 0 }
  0x2f   : > { %s1894_s29 = scalar_select %p1581_p3, 1, 0 }
  0x30   : > { %s1895_s5 = scalar_select %p1585_p5, 1, 0 }
  0x31   : > { %p155_p7 = scmp.lt.s32.totalorder %s1440_s18, 3  ;;  %s1445_s11 = smov [#allocation5]  }
  0x32   : > { %s167_s12 = sshll.u32 %s1445_s11, 4  ;;  %s1074_s13 = sshll.u32 %s1440_s18, 9  ;;  %s1594_s12 = int_to_ptr.vmem [resolvable:$true] %s167_s12 }
  0x33   : > { %p1590_p9 = pnand %p1035_p1, %p155_p7  ;;  %s1602_s21 = scalar_lea.hbm %s1884_s2, %s1074_s13 }
  0x34   : > { %s1284_s24 = scalar_lea.hbm %s1602_s21, 512  ;;  %s1289_s11 = scalar_lea.hbm %s1884_s2, 1024 }
  0x35   : > { %s1896_s7 = scalar_select %p1590_p9, 1, 0 }
  0x36   : > { %p1194_p0 = pneg %p1590_p9  ;;  %p1285_p4 = scmp.ne.s32.totalorder %s1602_s21, %s1284_s24 }
  0x37   : > { %p1290_p1 = scmp.lt.s32.totalorder %s1602_s21, %s1884_s2  ;;  %p1291_p7 = scmp.lt.s32.totalorder %s1289_s11, %s1284_s24 }
  0x38   : > { %p1608_p11 = pnand %p1194_p0, %p1887_p10  ;;  %p1287_p12 = pnand %p1285_p4, %p1258_p8 }
  0x39   : > { %p1292_p5 = por %p1291_p7, %p1290_p1 }
  0x3a   : > { %p1288_p13 = pneg %p1287_p12 }
  0x3c   : > { %p1293_p0 = pnand %p1292_p5, %p1288_p13 }
  0x3e   : > { %1296 = shalt.err (!%p1293_p0)
}
  0x3f   : > { %s1297_s20 = scalar_lea.vmem %s1604_s28, 512  ;;  %s1446_s27 = smov [#allocation7]  }
  0x40   : > { %p1298_p10 = scmp.ne.s32.totalorder %s1604_s28, %s1297_s20  ;;  %s1302_s9 = sshll.u32 %s1446_s27, 4  ;;  %s1303_s9 = int_to_ptr.vmem [resolvable:$false] %s1302_s9 }
  0x41   : > { %s1304_s25 = scalar_lea.vmem %s1303_s9, 1024  ;;  %p1305_p3 = scmp.lt.s32.totalorder %s1604_s28, %s1303_s9 }
  0x42   : > { %p1300_p4 = pnand %p1298_p10, %p1258_p8  ;;  %p1306_p2 = scmp.lt.s32.totalorder %s1304_s25, %s1297_s20 }
  0x44   : > { %p1301_p12 = pneg %p1300_p4  ;;  %p1307_p9 = por %p1306_p2, %p1305_p3 }
  0x46   : > { %p1308_p1 = pnand %p1307_p9, %p1301_p12 }
  0x48   : > { %1311 = shalt.err (!%p1308_p1)
}
  0x49   : > { %s1447_s24 = smov 32   ;;  %s1448_s11 = smov 2  }
  0x4a   : > { %1204 = dma.hbm_to_vmem [thread:$0]  (!%p1524_p6), %s1602_s21, 512, %s1604_s28, %s1532_s8, %s1447_s24, %s1447_s24, %s1448_s11  }
  0x4b   : > { %p1314_p8 = pneg %p1608_p11  ;;  %s1323_s13 = scalar_lea.vmem %s1594_s12, 4096 }
  0x4c   : > { %p1324_p10 = scmp.ne.s32.totalorder %s1594_s12, %s1323_s13  ;;  %p1331_p3 = scmp.lt.s32.totalorder %s1594_s12, %s1594_s12 }
  0x4d   : > { %p1332_p9 = scmp.lt.s32.totalorder %s1323_s13, %s1323_s13 }
  0x4e   : > { %p1326_p5 = pnand %p1324_p10, %p1314_p8 }
  0x4f   : > { %p1333_p13 = por %p1332_p9, %p1331_p3 }
  0x50   : > { %p1327_p2 = pneg %p1326_p5 }
  0x52   : > { %p1334_p7 = pnand %p1333_p13, %p1327_p2 }
  0x54   : > { %1337 = shalt.err (!%p1334_p7)
}
  0x55   : > { %s1898_s25 = smov 128   ;;  %p1899_p6 = scmp.ne.s32.totalorder %s1896_s7, 0 }
  0x56   : > { %1197 = dma.hbm_to_vmem [thread:$0]  (!%p1608_p11), %s1883_s1, 4096, %s1594_s12, [#allocation6], %s1898_s25, %s1898_s25, %s1444_s26  }
  0x57   : > { %225 = sbr.rel (%p1899_p6) target bundleno = 389 (0x185), region = 32  ;;  %s227_s28 = sand.u32 (!%p1899_p6), 1, %s1564_s30  }
  0x58   : > { %s1654_s21 = sand.u32 (!%p1899_p6), 1, %s1432_s16   ;;  %s228_s23 = scalar_lea.sflag (!%p1899_p6), [#allocation3], %s227_s28 }
  0x59   : > { %s1045_s14 = sshll.u32 (!%p1899_p6), %s1654_s21, 4  ;;  %p1900_p0 = scmp.ne.s32.totalorder (!%p1899_p6), %s1893_s10, 0 }
  0x5a   : > { %s1657_s20 = scalar_lea.vmem (!%p1899_p6), [#allocation2], %s1045_s14 }
  0x5c   : > { %1407 = dma.done.wait (%p1900_p0), %s228_s23, 256  }
  0x5d   : > { %1409 = vsyncadd (%p1900_p0), %s228_s23, 4294967040  ;;  %p1901_p11 = scmp.eq.s32.totalorder %s1564_s30, 0 }
  0x5f   : > { %1411 = dma.done.wait (%p1901_p11), [#allocation6], 4096   ;;  %p1902_p4 = pmov %p1901_p11 }
  0x60   : > { %s1047_s26 = sshll.u32 %s1654_s21, 5 }
  0x61   : > { %1413 = vsyncadd (%p1902_p4), [#allocation6], 4294963200  ;;  %s1670_s7 = scalar_lea.vmem [#allocation7], %s1047_s26 }
  0x62   : > { %1415 = dma.done.wait (%p1900_p0), %s228_s23, 512  }
  0x63   : > { %1417 = vsyncadd (%p1900_p0), %s228_s23, 4294966784  ;;  %v315_v0 = vld [vmem:[#allocation5 + $0x78] sm:$0xff]  ;;  %v314_v2 = vld [vmem:[#allocation5 + $0x70] sm:$0xff]  ;;  %vm333_vm0 = vcmask 1041409   ;;  %vm336_vm1 = vcmask 1042434   ;;  %vm339_vm2 = vcmask 1043459  }
  0x64   : > { %v460_v1 = vld [vmem:[#allocation5 + $0xf8] sm:$0xff]  ;;  %1112 = vmatprep.subr.mxu0 %v315_v0  ;;  %v459_v3 = vld [vmem:[#allocation5 + $0xf0] sm:$0xff]  ;;  %v313_v4 = vld [vmem:[#allocation5 + $0x68] sm:$0xff]  ;;  %vm342_vm3 = vcmask 1044484   ;;  %vm345_vm4 = vcmask 1045509   ;;  %vm348_vm5 = vcmask 1046534  }
  0x65   : > { %1147 = vmatprep.subr.mxu1 %v460_v1  ;;  %1113 = vmatpush3.msra.mxu0 %v315_v0  ;;  %v458_v5 = vld [vmem:[#allocation5 + $0xe8] sm:$0xff]  ;;  %v312_v6 = vld [vmem:[#allocation5 + $0x60] sm:$0xff]  ;;  %v311_v8 = vld [vmem:[#allocation5 + $0x58] sm:$0xff]  ;;  %vm351_vm6 = vcmask 1047559   ;;  %s1743_s10 = scalar_lea.vmem [#allocation8], %s1047_s26  ;;  %s1075_s12 = sshll.u32 %s1564_s30, 9 }
  0x66   : > { %1148 = vmatpush3.msra.mxu1 %v460_v1  ;;  %1114 = vmatprep.subr.mxu0 %v314_v2  ;;  %v457_v7 = vld [vmem:[#allocation5 + $0xe0] sm:$0xff]  ;;  %v456_v9 = vld [vmem:[#allocation5 + $0xd8] sm:$0xff]  ;;  %v310_v10 = vld [vmem:[#allocation5 + $0x50] sm:$0xff]  ;;  %s886_s27 = sshll.u32 %s1743_s10, 4  ;;  %s1808_s11 = scalar_lea.hbm %s1885_s3, %s1075_s12  ;;  %s1810_s27 = int_to_ptr.vmem [resolvable:$true] %s886_s27 }
  0x67   : > { %1149 = vmatprep.subr.mxu1 %v459_v3  ;;  %1115 = vmatpush3.msra.mxu0 %v314_v2  ;;  %v455_v11 = vld [vmem:[#allocation5 + $0xd0] sm:$0xff]  ;;  %v309_v12 = vld [vmem:[#allocation5 + $0x48] sm:$0xff]  ;;  %v308_v14 = vld [vmem:[#allocation5 + $0x40] sm:$0xff]  ;;  %s1049_s13 = sshll.u32 %s1654_s21, 1  ;;  %s868_s25 = scalar_lea.sflag [#allocation4], %s1654_s21 }
  0x68   : > { %1150 = vmatpush3.msra.mxu1 %v459_v3  ;;  %1116 = vmatprep.subr.mxu0 %v313_v4  ;;  %v454_v13 = vld [vmem:[#allocation5 + $0xc8] sm:$0xff]  ;;  %v453_v15 = vld [vmem:[#allocation5 + $0xc0] sm:$0xff]  ;;  %v307_v16 = vld [vmem:[#allocation5 + $0x38] sm:$0xff]  ;;  %s1338_s6 = scalar_lea.vmem %s1810_s27, 512  ;;  %p1903_p1 = scmp.ne.s32.totalorder %s1894_s29, 0 }
  0x69   : > { %1151 = vmatprep.subr.mxu1 %v458_v5  ;;  %1117 = vmatpush3.msra.mxu0 %v313_v4  ;;  %v452_v17 = vld [vmem:[#allocation5 + $0xb8] sm:$0xff]  ;;  %v306_v18 = vld [vmem:[#allocation5 + $0x30] sm:$0xff]  ;;  %v305_v20 = vld [vmem:[#allocation5 + $0x28] sm:$0xff]  ;;  %p1339_p12 = scmp.ne.s32.totalorder %s1810_s27, %s1338_s6  ;;  %s1450_s8 = smov [#allocation8]  }
  0x6a   : > { %1152 = vmatpush3.msra.mxu1 %v458_v5  ;;  %1118 = vmatprep.subr.mxu0 %v312_v6  ;;  %v451_v19 = vld [vmem:[#allocation5 + $0xb0] sm:$0xff]  ;;  %v450_v21 = vld [vmem:[#allocation5 + $0xa8] sm:$0xff]  ;;  %v304_v22 = vld [vmem:[#allocation5 + $0x20] sm:$0xff]  ;;  %s1342_s28 = sshll.u32 %s1450_s8, 4  ;;  %s1343_s28 = int_to_ptr.vmem [resolvable:$false] %s1342_s28 }
  0x6b   : > { %1153 = vmatprep.subr.mxu1 %v457_v7  ;;  %1119 = vmatpush3.msra.mxu0 %v312_v6  ;;  %v449_v23 = vld [vmem:[#allocation5 + $0xa0] sm:$0xff]  ;;  %v303_v24 = vld [vmem:[#allocation5 + $0x18] sm:$0xff]  ;;  %v302_v26 = vld [vmem:[#allocation5 + $0x10] sm:$0xff]  ;;  %p1340_p8 = pnand %p1339_p12, %p1903_p1  ;;  %s1344_s14 = scalar_lea.vmem %s1343_s28, 1024 }
  0x6c   : > { %1154 = vmatpush3.msra.mxu1 %v457_v7  ;;  %1120 = vmatprep.subr.mxu0 %v311_v8  ;;  %v448_v25 = vld [vmem:[#allocation5 + $0x98] sm:$0xff]  ;;  %v447_v27 = vld [vmem:[#allocation5 + $0x90] sm:$0xff]  ;;  %v301_v28 = vld [vmem:[#allocation5 + $0x8] sm:$0xff]  ;;  %p1345_p5 = scmp.lt.s32.totalorder %s1810_s27, %s1343_s28  ;;  %p1346_p2 = scmp.lt.s32.totalorder %s1344_s14, %s1338_s6 }
  0x6d   : > { %1155 = vmatprep.subr.mxu1 %v456_v9  ;;  %1121 = vmatpush3.msra.mxu0 %v311_v8  ;;  %v446_v29 = vld [vmem:[#allocation5 + $0x88] sm:$0xff]  ;;  %v300_v30 = vld [vmem:[#allocation5] sm:$0xff]  ;;  %v293_v34 = vld [vmem:[%s1670_s7 + $0x12] sm:$0x3]  ;;  %p1341_p10 = pneg %p1340_p8 }
  0x6e   : > { %1156 = vmatpush3.msra.mxu1 %v456_v9  ;;  %1122 = vmatprep.subr.mxu0 %v310_v10  ;;  %v445_v31 = vld [vmem:[#allocation5 + $0x80] sm:$0xff]  ;;  %v283_v33 = vld [vmem:[%s1657_s20 + $0x8] sm:$0xff]  ;;  %v292_v35 = vld [vmem:[%s1670_s7 + $0x10] sm:$0x3]  ;;  %v353_v37 = vrot.slane %v293_v34, 7  ;;  %p1347_p3 = por %p1346_p2, %p1345_p5 }
  0x6f   : > { %1157 = vmatprep.subr.mxu1 %v455_v11  ;;  %1123 = vmatpush3.msra.mxu0 %v310_v10  ;;  %v282_v32 = vld [vmem:[%s1657_s20] sm:$0xff]  ;;  %v475_v38 = vrot.slane %v292_v35, 1  ;;  %v296_v48 = vld [vmem:[%s1670_s7 + $0x18] sm:$0x3]  ;;  %v297_v56 = vld [vmem:[%s1670_s7 + $0x1a] sm:$0x3] }
  0x70   : > { %1158 = vmatpush3.msra.mxu1 %v455_v11  ;;  %1124 = vmatprep.subr.mxu0 %v309_v12  ;;  %v294_v36 = vld [vmem:[%s1670_s7 + $0x14] sm:$0x3]  ;;  %v284_v39 = vld [vmem:[%s1670_s7] sm:$0x3]  ;;  %v285_v40 = vld [vmem:[%s1670_s7 + $0x2] sm:$0x3]  ;;  %v354_v43 = vsel %vm333_vm0, %v353_v37, %v292_v35  ;;  %p1348_p9 = pnand %p1347_p3, %p1341_p10 }
  0x71   : > { %1159 = vmatprep.subr.mxu1 %v454_v13  ;;  %1125 = vmatpush3.msra.mxu0 %v309_v12  ;;  %v295_v41 = vld [vmem:[%s1670_s7 + $0x16] sm:$0x3]  ;;  %v355_v42 = vrot.slane %v294_v36, 6  ;;  %v477_v44 = vrot.slane %v294_v36, 7  ;;  %v286_v45 = vld [vmem:[%s1670_s7 + $0x4] sm:$0x3]  ;;  %v476_v50 = vsel %vm333_vm0, %v293_v34, %v475_v38 }
  0x72   : > { %1160 = vmatpush3.msra.mxu1 %v454_v13  ;;  %1126 = vmatprep.subr.mxu0 %v308_v14  ;;  %v332_v46 = vrot.slane %v285_v40, 7  ;;  %v461_v47 = vrot.slane %v284_v39, 1  ;;  %v357_v49 = vrot.slane %v295_v41, 5  ;;  %v479_v52 = vrot.slane %v295_v41, 6  ;;  %v287_v53 = vld [vmem:[%s1670_s7 + $0x6] sm:$0x3] }
  0x73   : > { %1161 = vmatprep.subr.mxu1 %v453_v15  ;;  %1127 = vmatpush3.msra.mxu0 %v308_v14  ;;  %v356_v51 = vsel %vm336_vm1, %v355_v42, %v354_v43  ;;  %v335_v54 = vrot.slane %v286_v45, 6  ;;  %v463_v55 = vrot.slane %v286_v45, 7  ;;  %v359_v57 = vrot.slane %v296_v48, 4  ;;  %v288_v63 = vld [vmem:[%s1670_s7 + $0x8] sm:$0x3] }
  0x74   : > { %1162 = vmatpush3.msra.mxu1 %v453_v15  ;;  %1128 = vmatprep.subr.mxu0 %v307_v16  ;;  %v478_v58 = vsel %vm336_vm1, %v477_v44, %v476_v50  ;;  %v334_v59 = vsel %vm333_vm0, %v332_v46, %v284_v39  ;;  %v462_v60 = vsel %vm333_vm0, %v285_v40, %v461_v47  ;;  %v481_v62 = vrot.slane %v296_v48, 5  ;;  %v298_v2 = vld [vmem:[%s1670_s7 + $0x1c] sm:$0x3]  ;;  %v289_v9 = vld [vmem:[%s1670_s7 + $0xa] sm:$0x3] }
  0x75   : > { %1163 = vmatprep.subr.mxu1 %v452_v17  ;;  %1129 = vmatpush3.msra.mxu0 %v307_v16  ;;  %v358_v61 = vsel %vm339_vm2, %v357_v49, %v356_v51  ;;  %v338_v0 = vrot.slane %v287_v53, 5  ;;  %v465_v1 = vrot.slane %v287_v53, 6  ;;  %v361_v3 = vrot.slane %v297_v56, 3  ;;  %v299_v16 = vld [vmem:[%s1670_s7 + $0x1e] sm:$0x3] }
  0x76   : > { %1164 = vmatpush3.msra.mxu1 %v452_v17  ;;  %1130 = vmatprep.subr.mxu0 %v306_v18  ;;  %v480_v4 = vsel %vm339_vm2, %v479_v52, %v478_v58  ;;  %v337_v5 = vsel %vm336_vm1, %v335_v54, %v334_v59  ;;  %v464_v6 = vsel %vm336_vm1, %v463_v55, %v462_v60  ;;  %v483_v8 = vrot.slane %v297_v56, 4 }
  0x77   : > { %1165 = vmatprep.subr.mxu1 %v451_v19  ;;  %1131 = vmatpush3.msra.mxu0 %v306_v18  ;;  %v360_v7 = vsel %vm342_vm3, %v359_v57, %v358_v61  ;;  %v341_v10 = vrot.slane %v288_v63, 4  ;;  %v467_v11 = vrot.slane %v288_v63, 5  ;;  %v363_v12 = vrot.slane %v298_v2, 2 }
  0x78   : > { %1166 = vmatpush3.msra.mxu1 %v451_v19  ;;  %1132 = vmatprep.subr.mxu0 %v305_v20  ;;  %v482_v13 = vsel %vm342_vm3, %v481_v62, %v480_v4  ;;  %v340_v14 = vsel %vm339_vm2, %v338_v0, %v337_v5  ;;  %v466_v15 = vsel %vm339_vm2, %v465_v1, %v464_v6  ;;  %v1449_v18 = vmov 1966171168  }
  0x79   : > { %1167 = vmatprep.subr.mxu1 %v450_v21  ;;  %1133 = vmatpush3.msra.mxu0 %v305_v20  ;;  %v362_v17 = vsel %vm345_vm4, %v361_v3, %v360_v7  ;;  %v570_v19 = vunpack.c.l.s4 %v1449_v18  ;;  %v572_v20 = vlaneseq }
  0x7a   : > { %1168 = vmatpush3.msra.mxu1 %v450_v21  ;;  %1134 = vmatprep.subr.mxu0 %v304_v22  ;;  %v485_v21 = vrot.slane %v298_v2, 3 }
  0x7b   : > { %1169 = vmatprep.subr.mxu1 %v449_v23  ;;  %1135 = vmatpush3.msra.mxu0 %v304_v22  ;;  %v290_v22 = vld [vmem:[%s1670_s7 + $0xc] sm:$0x3]  ;;  %v573_v35 = vshrl.u32 %v572_v20, 7 }
  0x7c   : > { %1170 = vmatpush3.msra.mxu1 %v449_v23  ;;  %1136 = vmatprep.subr.mxu0 %v303_v24  ;;  %v344_v23 = vrot.slane %v289_v9, 3  ;;  %v471_v34 = vrot.slane %v290_v22, 3 }
  0x7d   : > { %1171 = vmatprep.subr.mxu1 %v448_v25  ;;  %1137 = vmatpush3.msra.mxu0 %v303_v24  ;;  %v469_v24 = vrot.slane %v289_v9, 4 }
  0x7e   : > { %1172 = vmatpush3.msra.mxu1 %v448_v25  ;;  %1138 = vmatprep.subr.mxu0 %v302_v26  ;;  %v484_v25 = vsel %vm345_vm4, %v483_v8, %v482_v13 }
  0x7f   : > { %1173 = vmatprep.subr.mxu1 %v447_v27  ;;  %1139 = vmatpush3.msra.mxu0 %v302_v26  ;;  %v343_v26 = vsel %vm342_vm3, %v341_v10, %v340_v14  ;;  %v486_v36 = vsel %vm348_vm5, %v485_v21, %v484_v25 }
  0x80   : > { %1174 = vmatpush3.msra.mxu1 %v447_v27  ;;  %1140 = vmatprep.subr.mxu0 %v301_v28  ;;  %v468_v27 = vsel %vm342_vm3, %v467_v11, %v466_v15  ;;  %v346_v37 = vsel %vm345_vm4, %v344_v23, %v343_v26 }
  0x81   : > { %1175 = vmatprep.subr.mxu1 %v446_v29  ;;  %1141 = vmatpush3.msra.mxu0 %v301_v28  ;;  %v364_v28 = vsel %vm348_vm5, %v363_v12, %v362_v17  ;;  %v470_v38 = vsel %vm345_vm4, %v469_v24, %v468_v27 }
  0x82   : > { %1176 = vmatpush3.msra.mxu1 %v446_v29  ;;  %1142 = vmatprep.subr.mxu0 %v300_v30  ;;  %v365_v29 = vrot.slane %v299_v16, 1  ;;  %v472_v44 = vsel %vm348_vm5, %v471_v34, %v470_v38 }
  0x83   : > { %1177 = vmatprep.subr.mxu1 %v445_v31  ;;  %1143 = vmatpush3.msra.mxu0 %v300_v30  ;;  %v571_v30 = vunpack.c.0.s8 %v570_v19 }
  0x84   : > { %1144 = vmatprep.mubr.f32.mxu0 %v282_v32  ;;  %1178 = vmatpush3.msra.mxu1 %v445_v31  ;;  %v487_v31 = vrot.slane %v299_v16, 2  ;;  %v366_v41 = vsel %vm351_vm6, %v365_v29, %v364_v28 }
  0x85   : > { %1179 = vmatprep.mubr.f32.mxu1 %v282_v32  ;;  %1145 = vmatmul.mubr.f32.vlgmr.msra.gmra.mxu0 %v283_v33  ;;  %v291_v32 = vld [vmem:[%s1670_s7 + $0xe] sm:$0x3]  ;;  %v1720_v45 = vsub.s32 %v571_v30, %v573_v35 }
  0x86   : > { %1180 = vmatmul.mubr.f32.vlgmr.msra.gmra.mxu1 %v283_v33  ;;  %v347_v33 = vrot.slane %v290_v22, 2  ;;  %v350_v39 = vrot.slane %v291_v32, 1  ;;  %v473_v40 = vrot.slane %v291_v32, 2  ;;  %v488_v42 = vsel %vm351_vm6, %v487_v31, %v486_v36 }
  0x88   : > { %v349_v43 = vsel %vm348_vm5, %v347_v33, %v346_v37  ;;  %v474_v51 = vsel %vm351_vm6, %v473_v40, %v472_v44 }
  0x89   : > { %v352_v50 = vsel %vm351_vm6, %v350_v39, %v349_v43 }
 0x145   : > { %v1146_v46 = vpop.f32.mrf.mxu0 }
 0x146   : > { %v1181_v47 = vpop.f32.mrf.mxu1  ;;  %v441_v48 = vadd.f32 %v1146_v46, %v366_v41 }
 0x147   : > { %v1722_v49 = vadd.f32 %v1181_v47, %v488_v42  ;;  %v435_v52 = vpop.f32.mrf.mxu0 }
 0x148   : > { %v557_v53 = vpop.f32.mrf.mxu1  ;;  %v617_v54 = vcombine.high %v441_v48, %v441_v48  ;;  %v624_v55 = vrot.slane %v441_v48, %v1720_v45  ;;  %v1727_v56 = vmul.f32 %v441_v48, %v441_v48  ;;  %v436_v60 = vadd.f32 %v435_v52, %v352_v50 }
 0x149   : > { %v749_v57 = vcombine.high %v1722_v49, %v1722_v49  ;;  %v756_v58 = vrot.slane %v1722_v49, %v1720_v45  ;;  %v1735_v59 = vmul.f32 %v1722_v49, %v1722_v49  ;;  %v1737_v61 = vadd.f32 %v557_v53, %v474_v51 }
 0x14a   : > { %v631_v62 = vrot.slane %v617_v54, %v1720_v45  ;;  %v632_v63 = vcombine.high %v624_v55, %v624_v55  ;;  %v640_v0 = vrot.slane %v624_v55, %v1720_v45  ;;  %1054 = vst.sshfl [vmem:[%s1743_s10 + $0x10] sm:$0x1 pattern:$0x73625140] %v624_v55  ;;  %v568_v4 = vcombine.high %v436_v60, %v436_v60 }
 0x14b   : > { %v763_v1 = vrot.slane %v749_v57, %v1720_v45  ;;  %v764_v2 = vcombine.high %v756_v58, %v756_v58  ;;  %v772_v3 = vrot.slane %v756_v58, %v1720_v45  ;;  %1062 = vst.sshfl [vmem:[%s1743_s10 + $0x11] sm:$0x1 pattern:$0x73625140] %v756_v58  ;;  %v575_v5 = vrot.slane %v436_v60, %v1720_v45 }
 0x14c   : > { %v633_v6 = vcombine.high %v631_v62, %v631_v62  ;;  %v647_v7 = vrot.slane %v631_v62, %v1720_v45  ;;  %v654_v8 = vrot.slane %v632_v63, %v1720_v45  ;;  %v662_v9 = vcombine.high %v640_v0, %v640_v0  ;;  %1055 = vst.sshfl [vmem:[%s1743_s10 + $0x12] sm:$0x1 pattern:$0x73625140] %v632_v63 }
 0x14d   : > { %1056 = vst.sshfl [vmem:[%s1743_s10 + $0x18] sm:$0x1 pattern:$0x73625140] %v631_v62  ;;  %v765_v10 = vcombine.high %v763_v1, %v763_v1  ;;  %v779_v11 = vrot.slane %v763_v1, %v1720_v45  ;;  %v786_v12 = vrot.slane %v764_v2, %v1720_v45  ;;  %v794_v13 = vcombine.high %v772_v3, %v772_v3 }
 0x14e   : > { %1064 = vst.sshfl [vmem:[%s1743_s10 + $0x19] sm:$0x1 pattern:$0x73625140] %v763_v1  ;;  %v661_v14 = vrot.slane %v633_v6, %v1720_v45  ;;  %v663_v15 = vcombine.high %v647_v7, %v647_v7  ;;  %v664_v16 = vcombine.high %v654_v8, %v654_v8  ;;  %692 = vst [vmem:[%s1743_s10 + $0x14] sm:$0x1] %v662_v9 }
 0x14f   : > { %1063 = vst.sshfl [vmem:[%s1743_s10 + $0x13] sm:$0x1 pattern:$0x73625140] %v764_v2  ;;  %v582_v17 = vrot.slane %v568_v4, %v1720_v45  ;;  %v793_v18 = vrot.slane %v765_v10, %v1720_v45  ;;  %v795_v19 = vcombine.high %v779_v11, %v779_v11  ;;  %v796_v20 = vcombine.high %v786_v12, %v786_v12 }
 0x150   : > { %1050 = vst.sshfl [vmem:[%s1743_s10] sm:$0x1 pattern:$0x73625140] %v575_v5  ;;  %824 = vst [vmem:[%s1743_s10 + $0x15] sm:$0x1] %v794_v13  ;;  %v583_v21 = vcombine.high %v575_v5, %v575_v5  ;;  %v665_v22 = vcombine.high %v661_v14, %v661_v14  ;;  %v591_v24 = vrot.slane %v575_v5, %v1720_v45 }
 0x151   : > { %1057 = vst.sshfl [vmem:[%s1743_s10 + $0x1a] sm:$0x1 pattern:$0x73625140] %v633_v6  ;;  %693 = vst [vmem:[%s1743_s10 + $0x16] sm:$0x1] %v664_v16  ;;  %v584_v23 = vcombine.high %v582_v17, %v582_v17  ;;  %v598_v25 = vrot.slane %v582_v17, %v1720_v45  ;;  %v797_v26 = vcombine.high %v793_v18, %v793_v18 }
 0x152   : > { %1065 = vst.sshfl [vmem:[%s1743_s10 + $0x1b] sm:$0x1 pattern:$0x73625140] %v765_v10  ;;  %696 = vst [vmem:[%s1743_s10 + $0x1c] sm:$0x1] %v663_v15  ;;  %v605_v27 = vrot.slane %v583_v21, %v1720_v45  ;;  %v830_v28 = vadd.f32 %v441_v48, %v436_v60  ;;  %v845_v29 = vmul.f32 %v436_v60, %v436_v60 }
 0x153   : > { %1052 = vst.sshfl [vmem:[%s1743_s10 + $0x8] sm:$0x1 pattern:$0x73625140] %v582_v17  ;;  %825 = vst [vmem:[%s1743_s10 + $0x17] sm:$0x1] %v796_v20  ;;  %v612_v30 = vrot.slane %v584_v23, %v1720_v45  ;;  %v613_v31 = vcombine.high %v591_v24, %v591_v24  ;;  %v614_v32 = vcombine.high %v598_v25, %v598_v25 }
 0x154   : > { %828 = vst [vmem:[%s1743_s10 + $0x1d] sm:$0x1] %v795_v19  ;;  %1051 = vst.sshfl [vmem:[%s1743_s10 + $0x2] sm:$0x1 pattern:$0x73625140] %v583_v21  ;;  %v700_v33 = vcombine.high %v1737_v61, %v1737_v61  ;;  %v615_v34 = vcombine.high %v605_v27, %v605_v27  ;;  %v847_v36 = vadd.f32 %v1727_v56, %v845_v29 }
 0x155   : > { %697 = vst [vmem:[%s1743_s10 + $0x1e] sm:$0x1] %v665_v22  ;;  %1053 = vst.sshfl [vmem:[%s1743_s10 + $0xa] sm:$0x1 pattern:$0x73625140] %v584_v23  ;;  %v707_v37 = vrot.slane %v1737_v61, %v1720_v45  ;;  %v616_v38 = vcombine.high %v612_v30, %v612_v30  ;;  %v837_v40 = vadd.f32 %v1722_v49, %v1737_v61 }
 0x156   : > { %829 = vst [vmem:[%s1743_s10 + $0x1f] sm:$0x1] %v797_v26  ;;  %v831_v35 = vrot.slane %v830_v28, 4  ;;  %684 = vst [vmem:[%s1743_s10 + $0x4] sm:$0x1] %v613_v31  ;;  %v714_v39 = vrot.slane %v700_v33, %v1720_v45  ;;  %v854_v41 = vmul.f32 %v1737_v61, %v1737_v61  ;;  %v848_v43 = vrot.slane %v847_v36, 4 }
 0x157   : > { %688 = vst [vmem:[%s1743_s10 + $0xc] sm:$0x1] %v614_v32  ;;  %685 = vst [vmem:[%s1743_s10 + $0x6] sm:$0x1] %v615_v34  ;;  %v715_v44 = vcombine.high %v707_v37, %v707_v37  ;;  %v723_v46 = vrot.slane %v707_v37, %v1720_v45  ;;  %v838_v50 = vrot.slane %v837_v40, 4 }
 0x158   : > { %v832_v42 = vadd.f32 %v831_v35, %v830_v28  ;;  %1058 = vst.sshfl [vmem:[%s1743_s10 + $0x1] sm:$0x1 pattern:$0x73625140] %v707_v37  ;;  %689 = vst [vmem:[%s1743_s10 + $0xe] sm:$0x1] %v616_v38  ;;  %v716_v47 = vcombine.high %v714_v39, %v714_v39  ;;  %v730_v48 = vrot.slane %v714_v39, %v1720_v45 }
 0x159   : > { %1060 = vst.sshfl [vmem:[%s1743_s10 + $0x9] sm:$0x1 pattern:$0x73625140] %v714_v39  ;;  %v856_v49 = vadd.f32 %v1735_v59, %v854_v41  ;;  %v849_v52 = vadd.f32 %v848_v43, %v847_v36  ;;  %v737_v53 = vrot.slane %v715_v44, %v1720_v45  ;;  %v745_v54 = vcombine.high %v723_v46, %v723_v46 }
 0x15a   : > { %v833_v51 = vrot.slane %v832_v42, 2  ;;  %1059 = vst.sshfl [vmem:[%s1743_s10 + $0x3] sm:$0x1 pattern:$0x73625140] %v715_v44  ;;  %v744_v55 = vrot.slane %v716_v47, %v1720_v45  ;;  %v746_v56 = vcombine.high %v730_v48, %v730_v48  ;;  %v839_v57 = vadd.f32 %v838_v50, %v837_v40 }
 0x15b   : > { %1061 = vst.sshfl [vmem:[%s1743_s10 + $0xb] sm:$0x1 pattern:$0x73625140] %v716_v47  ;;  %v857_v58 = vrot.slane %v856_v49, 4  ;;  %v850_v59 = vrot.slane %v849_v52, 2  ;;  %v747_v61 = vcombine.high %v737_v53, %v737_v53 }
 0x15c   : > { %v834_v60 = vadd.f32 %v833_v51, %v832_v42  ;;  %816 = vst [vmem:[%s1743_s10 + $0x5] sm:$0x1] %v745_v54  ;;  %v748_v45 = vcombine.high %v744_v55, %v744_v55  ;;  %820 = vst [vmem:[%s1743_s10 + $0xd] sm:$0x1] %v746_v56  ;;  %v840_v62 = vrot.slane %v839_v57, 2 }
 0x15d   : > { %v858_v63 = vadd.f32 %v857_v58, %v856_v49  ;;  %v851_v0 = vadd.f32 %v850_v59, %v849_v52  ;;  %817 = vst [vmem:[%s1743_s10 + $0x7] sm:$0x1] %v747_v61 }
 0x15e   : > { %v835_v1 = vrot.slane %v834_v60, 1  ;;  %821 = vst [vmem:[%s1743_s10 + $0xf] sm:$0x1] %v748_v45  ;;  %v841_v2 = vadd.f32 %v840_v62, %v839_v57 }
 0x15f   : > { %v859_v3 = vrot.slane %v858_v63, 2 }
 0x160   : > { %1351 = shalt.err (!%p1348_p9)
}
 0x161   : > { %s1352_s23 = scalar_lea.hbm %s1808_s11, 512  ;;  %s1356_s7 = scalar_lea.hbm %s1885_s3, 1024 }
 0x162   : > { %p1353_p13 = scmp.ne.s32.totalorder %s1808_s11, %s1352_s23  ;;  %p1357_p0 = scmp.lt.s32.totalorder %s1808_s11, %s1885_s3 }
 0x163   : > { %p1358_p11 = scmp.lt.s32.totalorder %s1356_s7, %s1352_s23 }
 0x164   : > { %p1354_p7 = pnand %p1353_p13, %p1903_p1 }
 0x165   : > { %p1359_p4 = por %p1358_p11, %p1357_p0 }
 0x166   : > { %p1355_p6 = pneg %p1354_p7 }
 0x168   : > { %p1360_p12 = pnand %p1359_p4, %p1355_p6 }
 0x16a   : > { %1363 = shalt.err (!%p1360_p12)
}
 0x16b   : > { %s1451_s9 = smov 32   ;;  %s1452_s24 = smov 2   ;;  %v852_v4 = vrot.slane %v851_v0, 1  ;;  %v842_v5 = vrot.slane %v841_v2, 1  ;;  %v860_v6 = vadd.f32 %v859_v3, %v858_v63  ;;  %v836_v7 = vadd.f32 %v835_v1, %v834_v60 }
 0x16c   : > { %1190 = dma.vmem_to_hbm [thread:$0]  (%p1903_p1), %s1810_s27, 512, %s1808_s11, %s868_s25, %s1451_s9, %s1451_s9, %s1452_s24   ;;  %vm864_vm7 = vcmask 1040384  }
 0x16d   : > { %v843_v8 = vadd.f32 %v842_v5, %v841_v2  ;;  %v853_v9 = vadd.f32 %v852_v4, %v851_v0  ;;  %v861_v10 = vrot.slane %v860_v6, 1  ;;  %s1070_s6 = sshll.u32 %s1564_s30, 5  ;;  %s278_s8 = scalar_lea.vmem [#allocation9], %s1049_s13 }
 0x16e   : > { %s902_s28 = sshll.u32 %s278_s8, 4  ;;  %s1845_s27 = scalar_lea.hbm %s1886_s4, %s1070_s6  ;;  %s903_s28 = int_to_ptr.vmem [resolvable:$true] %s902_s28 }
 0x16f   : > { %v862_v11 = vadd.f32 %v861_v10, %v860_v6  ;;  %v844_v12 = vadd.f32 %v843_v8, %v836_v7  ;;  %s873_s11 = scalar_lea.sflag [#allocation10], %s1654_s21  ;;  %s1364_s25 = scalar_lea.vmem %s903_s28, 32 }
 0x170   : > { %p1365_p8 = scmp.ne.s32.totalorder %s903_s28, %s1364_s25  ;;  %s1453_s30 = smov [#allocation9]  }
 0x171   : > { %v863_v13 = vadd.f32 %v862_v11, %v853_v9  ;;  %s1368_s13 = sshll.u32 %s1453_s30, 4  ;;  %s1369_s13 = int_to_ptr.vmem [resolvable:$false] %s1368_s13 }
 0x172   : > { %p1366_p10 = pnand %p1365_p8, %p1903_p1  ;;  %s1370_s20 = scalar_lea.vmem %s1369_s13, 64 }
 0x173   : > { %v865_v14 = vsel %vm864_vm7, %v844_v12, %v863_v13  ;;  %p1371_p2 = scmp.lt.s32.totalorder %s903_s28, %s1369_s13  ;;  %p1372_p3 = scmp.lt.s32.totalorder %s1370_s20, %s1364_s25 }
 0x174   : > { %866 = vst [vmem:[%s278_s8] sm:$0x3] %v865_v14  ;;  %p1367_p5 = pneg %p1366_p10 }
 0x175   : > { %p1373_p9 = por %p1372_p3, %p1371_p2 }
 0x177   : > { %p1374_p13 = pnand %p1373_p9, %p1367_p5 }
 0x179   : > { %1377 = shalt.err (!%p1374_p13)
}
 0x17a   : > { %s1378_s26 = scalar_lea.hbm %s1845_s27, 32  ;;  %s1382_s10 = scalar_lea.hbm %s1886_s4, 64 }
 0x17b   : > { %p1379_p7 = scmp.ne.s32.totalorder %s1845_s27, %s1378_s26  ;;  %p1383_p11 = scmp.lt.s32.totalorder %s1845_s27, %s1886_s4 }
 0x17c   : > { %p1384_p4 = scmp.lt.s32.totalorder %s1382_s10, %s1378_s26 }
 0x17d   : > { %p1380_p6 = pnand %p1379_p7, %p1903_p1 }
 0x17e   : > { %p1385_p12 = por %p1384_p4, %p1383_p11 }
 0x17f   : > { %p1381_p0 = pneg %p1380_p6 }
 0x181   : > { %p1386_p8 = pnand %p1385_p12, %p1381_p0 }
 0x183   : > { %1389 = shalt.err (!%p1386_p8)
}
 0x184   : > { %1191 = dma.vmem_to_hbm [thread:$0]  (%p1903_p1), %s903_s28, 32, %s1845_s27, %s873_s11  }
 0x185 PF: > { %s914_s24 = sand.u32 1, %s1428_s15   ;;  %p1904_p10 = scmp.ne.s32.totalorder %s1895_s5, 0 }
 0x186   : > { %p1905_p5 = scmp.ge.s32.totalorder %s1440_s18, 2  ;;  %s915_s6 = scalar_lea.sflag [#allocation4], %s914_s24 }
 0x188   : > { %p1206_p2 = pnand %p1905_p5, %p1904_p10 }
 0x18a   : > { %p1207_p3 = pneg %p1206_p2 }
 0x18c   : > { %1419 = dma.done.wait (%p1207_p3), %s915_s6, 512  }
 0x18d   : > { %1421 = vsyncadd (%p1207_p3), %s915_s6, 4294966784  ;;  %s924_s8 = scalar_lea.sflag [#allocation10], %s914_s24 }
 0x18e   : > { %1423 = dma.done.wait (%p1207_p3), %s924_s8, 32  }
 0x18f   : > { %1425 = vsyncadd (%p1207_p3), %s924_s8, 4294967264  ;;  %p22_p1 = scmp.ge.s32.totalorder %s1500_s19, 4   ;;  %s1906_s15 = smov %s1432_s16 }
 0x190   : > { %s1907_s16 = smov %s1436_s17  ;;  %s1908_s17 = smov %s1509_s22 }
 0x191   : > { %s1909_s18 = smov %s1500_s19  ;;  %24 = sbr.rel (!%p22_p1) target bundleno = 8 (0x8), region = 110 }
 0x196   :  { %929 = vsyncpa [#allocation3], 1 }
 0x197   :  { %931 = vsyncpa [#allocation3 + $0x1], 1 }
 0x198   :  { %932 = vsyncpa [#allocation6], 1 }
 0x199   :  { %933 = vsyncpa [#allocation4], 1 }
 0x19a   :  { %935 = vsyncpa [#allocation4 + $0x1], 1 }
 0x19b   :  { %936 = vsyncpa [#allocation10], 1 }
 0x19c   :  { %938 = vsyncpa [#allocation10 + $0x1], 1 }

</bundles_post_ra>
